<compile_context>
chip_gen: v5e
topology: v5e:2x2
jax: 0.10.0
libtpu: 0.0.40
codegen_flags: <defaults>
</compile_context>

<pallas_src>
import jax
import jax.numpy as jnp
from jax.experimental import pallas as pl
from jax.experimental.pallas import tpu as pltpu


def _residual_linear_kernel(x_ref, w_ref, b_ref, o_ref):
    # x_ref: (TM, H) f32   w_ref: (H, H) bf16   b_ref: (1, H) f32   o_ref: (TM, H)
    x = x_ref[...]
    fn_x = jnp.dot(x.astype(jnp.bfloat16), w_ref[...],
                   preferred_element_type=jnp.float32)
    fn_x = fn_x + b_ref[...].astype(jnp.float32)          # bias broadcast over rows
    o_ref[...] = (fn_x + x.astype(jnp.float32)).astype(o_ref.dtype)


def _round_up(v, n):
    return ((v + n - 1) // n) * n


def _vmem_budget_bytes():
    cap = 64 << 20                      # conservative fallback (v7x per-TC VMEM)
    try:
        cap = pltpu.get_tpu_info().vmem_capacity_bytes
    except Exception:
        pass
    # Leave headroom for Mosaic internal scratch / semaphores:
    # ~48 MiB on v7x (64 MiB physical), ~96 MiB on v5e/v6e (128 MiB physical).
    return (int(cap) * 3) // 4


def residual_add(x, w, b, *, tm_max=1024):
    """y = fn(x) + x with fn = Linear(hidden, hidden), fused in one kernel.

    x: (batch, seq, hidden); w: (hidden, hidden); b: (hidden,)
    """
    batch, seq, hidden = x.shape
    m = batch * seq
    x2d = x.reshape(m, hidden)

    # W is VMEM-resident and tiny next to the activations: pre-cast it to bf16
    # once in the wrapper so the MXU sees a native bf16 operand (halves W HBM
    # bytes and VMEM footprint).  Bias stays f32 (added post-accumulation).
    w_bf16 = w.astype(jnp.bfloat16)
    b2d = b.astype(jnp.float32).reshape(1, hidden)

    x_isz = jnp.dtype(x.dtype).itemsize
    o_isz = x_isz
    budget = _vmem_budget_bytes()

    # Row tile: multiple of 8 sublanes, >= 2 grid steps when m allows, and
    # sized so (double-buffered x/out) + (single-buffered W/b) fit the budget.
    tm = min(tm_max, max(8, _round_up(pl.cdiv(m, 2), 8)))

    def _vmem_needed(t):
        x_buf = 2 * t * hidden * x_isz                    # x, double-buffered
        o_buf = 2 * t * hidden * o_isz                    # out, double-buffered
        w_buf = hidden * hidden * 2                       # W bf16, single-buffered
        b_buf = 8 * _round_up(hidden, 128) * 4            # b (padded sublane tile)
        return x_buf + o_buf + w_buf + b_buf + (2 << 20)  # + internal scratch

    while tm > 8 and _vmem_needed(tm) > budget:
        tm = max(8, _round_up(tm // 2, 8))

    grid_m = pl.cdiv(m, tm)

    cost = pl.CostEstimate(
        flops=2 * m * hidden * hidden,
        transcendentals=0,
        bytes_accessed=(m * hidden * (x_isz + o_isz)      # x read + y write
                        + hidden * hidden * 2             # W (bf16)
                        + hidden * 4),                    # b
    )

    out = pl.pallas_call(
        _residual_linear_kernel,
        out_shape=jax.ShapeDtypeStruct((m, hidden), x.dtype),
        grid_spec=pltpu.PrefetchScalarGridSpec(
            num_scalar_prefetch=0,
            grid=(grid_m,),
            in_specs=[
                # x: streamed over M (default double-buffered pipeline).
                pl.BlockSpec((tm, hidden), lambda i: (i, 0)),
                # W, b: grid-invariant -> VMEM-resident, single-buffered.
                pl.BlockSpec((hidden, hidden), lambda i: (0, 0),
                             pipeline_mode=pl.Buffered(1)),
                pl.BlockSpec((1, hidden), lambda i: (0, 0),
                             pipeline_mode=pl.Buffered(1)),
            ],
            out_specs=pl.BlockSpec((tm, hidden), lambda i: (i, 0)),
        ),
        compiler_params=pltpu.CompilerParams(
            dimension_semantics=("parallel",),
            vmem_limit_bytes=int(budget),
        ),
        cost_estimate=cost,
    )(x2d, w_bf16, b2d)

    return out.reshape(batch, seq, hidden)


if __name__ == "__main__":
    batch, seq, hidden = 2, 8, 32

    key = jax.random.PRNGKey(0)
    kx, kw, kb = jax.random.split(key, 3)

    x = jax.random.normal(kx, (batch, seq, hidden), dtype=jnp.float32)
    # Deterministic "Linear" parameters (synthetic, not a checkpoint load).
    w = jax.random.normal(kw, (hidden, hidden), dtype=jnp.float32) * 0.05
    b = jax.random.normal(kb, (hidden,), dtype=jnp.float32) * 0.01

    y = residual_add(x, w, b)
    jax.block_until_ready(y)

    # Reference: fn(x) + x in plain JAX (f32).  Tolerance relaxed because the
    # kernel feeds bf16 operands to the MXU (f32 accumulation is kept).
    y_ref = (x.reshape(-1, hidden) @ w + b + x.reshape(-1, hidden)).reshape(
        batch, seq, hidden)
    assert jnp.allclose(y, y_ref, atol=2e-2, rtol=2e-2), "mismatch vs reference"

    print("KERNEL_OK")
</pallas_src>

<mosaic_0001>
module attributes {stable_mosaic.version = 11 : i64} {
  func.func @_residual_linear_kernel(%arg0: i32, %arg1: memref<8x32xf32, #tpu.memory_space<vmem>>, %arg2: memref<32x32xbf16, #tpu.memory_space<vmem>>, %arg3: memref<1x32xf32, #tpu.memory_space<vmem>>, %arg4: memref<8x32xf32, #tpu.memory_space<vmem>>) attributes {dimension_semantics = [#tpu.dimension_semantics<parallel>], iteration_bounds = array<i64: 2>, scalar_prefetch = 0 : i64, scratch_operands = 0 : i64, tpu.core_type = #tpu.core_type<tc>, window_params = [{transform_indices = @transform_0, window_bounds = array<i64: 8, 32>}, {pipeline_mode = #tpu.pipeline_mode<synchronous>, transform_indices = @transform_1, window_bounds = array<i64: 32, 32>}, {pipeline_mode = #tpu.pipeline_mode<synchronous>, transform_indices = @transform_2, window_bounds = array<i64: 1, 32>}, {transform_indices = @transform_3, window_bounds = array<i64: 8, 32>}]} {
    %c0 = arith.constant 0 : index
    %c0_0 = arith.constant 0 : index
    %0 = vector.load %arg1[%c0, %c0_0] : memref<8x32xf32, #tpu.memory_space<vmem>>, vector<8x32xf32>
    %1 = arith.truncf %0 : vector<8x32xf32> to vector<8x32xbf16>
    %c0_1 = arith.constant 0 : index
    %c0_2 = arith.constant 0 : index
    %2 = vector.load %arg2[%c0_1, %c0_2] : memref<32x32xbf16, #tpu.memory_space<vmem>>, vector<32x32xbf16>
    %cst = arith.constant dense<0.000000e+00> : vector<8x32xf32>
    %3 = tpu.matmul %1, %2, %cst {dimension_numbers = #tpu.dot_dimension_numbers<[1], [0], [0], [1], [0, 0, 1, 1], [], []>} : vector<8x32xbf16>, vector<32x32xbf16>, vector<8x32xf32> -> vector<8x32xf32>
    %c0_3 = arith.constant 0 : index
    %c0_4 = arith.constant 0 : index
    %4 = vector.load %arg3[%c0_3, %c0_4] : memref<1x32xf32, #tpu.memory_space<vmem>>, vector<1x32xf32>
    %5 = vector.broadcast %4 : vector<1x32xf32> to vector<8x32xf32>
    %6 = arith.addf %3, %5 : vector<8x32xf32>
    %7 = arith.addf %6, %0 : vector<8x32xf32>
    %c0_5 = arith.constant 0 : index
    %c0_6 = arith.constant 0 : index
    %8 = vector.load %arg4[%c0_5, %c0_6] : memref<8x32xf32, #tpu.memory_space<vmem>>, vector<8x32xf32>
    tpu.vector_store %arg4[%c0_5, %c0_6], %7 {strides = array<i32>} : memref<8x32xf32, #tpu.memory_space<vmem>>, vector<8x32xf32>,
    return
  }
  func.func @transform_0(%arg0: i32) -> (i32, i32) {
    %c0_i32 = arith.constant 0 : i32
    %c0_i32_0 = arith.constant 0 : i32
    return %arg0, %c0_i32 : i32, i32
  }
  func.func @transform_1(%arg0: i32) -> (i32, i32) {
    %c0_i32 = arith.constant 0 : i32
    %c0_i32_0 = arith.constant 0 : i32
    %c0_i32_1 = arith.constant 0 : i32
    return %c0_i32, %c0_i32_0 : i32, i32
  }
  func.func @transform_2(%arg0: i32) -> (i32, i32) {
    %c0_i32 = arith.constant 0 : i32
    %c0_i32_0 = arith.constant 0 : i32
    %c0_i32_1 = arith.constant 0 : i32
    return %c0_i32, %c0_i32_0 : i32, i32
  }
  func.func @transform_3(%arg0: i32) -> (i32, i32) {
    %c0_i32 = arith.constant 0 : i32
    %c0_i32_0 = arith.constant 0 : i32
    return %arg0, %c0_i32 : i32, i32
  }
}

</mosaic_0001>

<bundles_post_ra>
// kernel: tpu_custom_call.1
= control target key start
LH: loop header
LB: loop body
LE: loop exit
PB: predicated region body
PF: predicated region fallthrough
CT: control target
= control target key end

     0   :  { %8 = vsyncpa [#allocation3], 0  ;;  %s722_s0 = inlined_call_operand.hbm [shape: f32[16,32], index: 0, kind: input, shape index: {}]   ;;  %s723_s1 = inlined_call_operand.hbm [shape: bf16[32,32], index: 1, kind: input, shape index: {}]   ;;  %s724_s2 = inlined_call_operand.vmem [shape: f32[1,32], index: 2, kind: input, shape index: {}]   ;;  %s725_s3 = inlined_call_operand.hbm [shape: f32[16,32], index: 3, kind: output, shape index: {}]  }
   0x1   :  { %10 = vsyncpa [#allocation3 + $0x1], 0 }
   0x2   :  { %11 = vsyncpa [#allocation6], 0 }
   0x3   :  { %12 = vsyncpa [#allocation4], 0 }
   0x4   :  { %14 = vsyncpa [#allocation4 + $0x1], 0  ;;  %s583_s12 = smov 0   ;;  %s585_s13 = smov 0  }
   0x5   :  { %s587_s14 = smov 0   ;;  %s589_s15 = smov 0  }
   0x6 LB: > { %s130_s18 = sshll.u32 %s723_s1, 4  ;;  %s607_s19 = sadd.s32 4294967295, %s558_s15   ;;  %s558_s15 = sphi %s589_s15, %s735_s15   ;;  %s554_s14 = sphi %s587_s14, %s734_s14   ;;  %s550_s13 = sphi %s585_s13, %s733_s13   ;;  %s546_s12 = sphi %s583_s12, %s732_s12   ;;  %s131_s18 = int_to_ptr.hbm [resolvable:$true] %s130_s18 }
   0x7   : > { %p344_p0 = scmp.ge.s32.totalorder %s558_s15, 1  ;;  %p41_p1 = scmp.eq.s32.totalorder %s607_s19, 0 }
   0x8   : > { %p119_p2 = scmp.lt.s32.totalorder %s558_s15, 3  ;;  %s560_s21 = smov [#allocation5]  }
   0x9   : > { %s132_s22 = sshll.u32 %s560_s21, 4  ;;  %s561_s23 = smov 64   ;;  %s133_s22 = int_to_ptr.vmem [resolvable:$true] %s132_s22 }
   0xa   : > { %p612_p3 = pnand %p344_p0, %p119_p2  ;;  %s562_s24 = smov 4  }
   0xb   : > { %s343_s25 = sadd.s32 4294967294, %s558_s15   ;;  %s623_s26 = sadd.s32 1, %s558_s15  }
   0xc   : > { %p376_p4 = pneg %p612_p3  ;;  %s27_s27 = sadd.s32 1, %s554_s14 }
   0xd   : > { %s24_s28 = ssub.s32 %s558_s15, %s623_s26  ;;  %p34_p7 = scmp.ne.s32.totalorder %s554_s14, %s550_s13 }
   0xe   : > { %p377_p6 = pnand %p376_p4, %p41_p1  ;;  %p25_p8 = scmp.eq.s32.totalorder %s24_s28, 0 }
   0xf   : > { %p35_p9 = scmp.eq.s32.totalorder %s558_s15, 0  ;;  %p40_p10 = scmp.ne.s32.totalorder %s550_s13, %s546_s12 }
  0x10   : > { %379 = dma.hbm_to_vmem [thread:$0]  (!%p377_p6), %s131_s18, 256, %s133_s22, [#allocation6], %s561_s23, %s561_s23, %s562_s24  }
  0x11   : > { %p106_p11 = scmp.eq.s32.totalorder %s607_s19, 1  ;;  %p639_p12 = por %p41_p1, %p40_p10 }
  0x12   : > { %s635_s29 = scalar_select %p25_p8, %s554_s14, %s27_s27  }
  0x13   : > { %p643_p13 = por %p106_p11, %p34_p7  ;;  %p112_p0 = scmp.eq.s32.totalorder %s343_s25, 1 }
  0x14   : > { %p36_p2 = por %p35_p9, %p34_p7  ;;  %s149_s5 = sand.u32 1, %s554_s14  }
  0x15   : > { %p648_p4 = por %p112_p0, %p40_p10  ;;  %p389_p6 = scmp.lt.s32.totalorder %s558_s15, 2 }
  0x16   : > { %s347_s7 = sshll.u32 %s149_s5, 3  ;;  %s348_s8 = sshll.u32 %s558_s15, 3 }
  0x17   : > { %s157_s11 = scalar_lea.hbm %s722_s0, %s348_s8  ;;  %s153_s17 = scalar_lea.vmem [#allocation2], %s347_s7 }
  0x18   : > { %s159_s16 = sshll.u32 %s157_s11, 4  ;;  %s161_s18 = sshll.u32 %s153_s17, 4  ;;  %s160_s16 = int_to_ptr.hbm [resolvable:$true] %s159_s16  ;;  %s162_s18 = int_to_ptr.vmem [resolvable:$true] %s161_s18 }
  0x19   : > { %p657_p8 = pnand %p389_p6, %p36_p2  ;;  %s150_s22 = scalar_lea.sflag [#allocation3], %s149_s5 }
  0x1a   : > { %s458_s23 = sshra.s32 %s160_s16, 4  ;;  %s465_s28 = scalar_lea.hbm %s722_s0, 16  ;;  %s459_s23 = int_to_ptr.hbm [resolvable:$true] %s458_s23 }
  0x1b   : > { %s460_s24 = scalar_lea.hbm %s459_s23, 8  ;;  %p462_p9 = pneg %p657_p8 }
  0x1c   : > { %p461_p7 = scmp.ne.s32.totalorder %s459_s23, %s460_s24  ;;  %p466_p0 = scmp.lt.s32.totalorder %s459_s23, %s722_s0 }
  0x1d   : > { %p467_p2 = scmp.lt.s32.totalorder %s465_s28, %s460_s24 }
  0x1e   : > { %p463_p10 = pnand %p462_p9, %p461_p7 }
  0x1f   : > { %p468_p6 = por %p467_p2, %p466_p0 }
  0x20   : > { %p464_p11 = pneg %p463_p10 }
  0x22   : > { %p469_p5 = pnand %p468_p6, %p464_p11 }
  0x24   : > { %472 = shalt.err (!%p469_p5)
}
  0x25   : > { %383 = dma.hbm_to_vmem [thread:$0]  (!%p657_p8), %s160_s16, 128, %s162_s18, %s150_s22  }
  0x26   : > { %170 = sbr.rel (%p612_p3) target bundleno = 188 (0xbc), region = 32  ;;  %s674_s5 = sand.u32 (!%p612_p3), 1, %s550_s13  }
  0x27   : > { %s350_s9 = sshll.u32 (!%p612_p3), %s674_s5, 3  ;;  %s173_s10 = scalar_lea.sflag (!%p612_p3), [#allocation3], %s674_s5 }
  0x28   : > { %s176_s11 = scalar_lea.vmem (!%p612_p3), [#allocation2], %s350_s9 }
  0x2b   : > { %533 = dma.done.wait (%p639_p12), %s173_s10, 128  }
  0x2c   : > { %535 = vsyncadd (%p639_p12), %s173_s10, 4294967168 }
  0x2d   : > { %537 = dma.done.wait (%p41_p1), [#allocation6], 256  }
  0x2e   : > { %539 = vsyncadd (%p41_p1), [#allocation6], 4294967040  ;;  %v367_v0 = vld [vmem:[#allocation5 + $0x8] sm:$0xff]  ;;  %v366_v1 = vld [vmem:[#allocation5] sm:$0xff]  ;;  %vm228_vm0 = vcmask 261120   ;;  %s363_s20 = sshll.u32 %s607_s19, 3 }
  0x2f   : > { %238 = vmatpush.bf16.msra.mxu0 %v367_v0  ;;  %v206_v2 = vld [vmem:[%s176_s11] sm:$0xff]  ;;  %s258_s21 = scalar_lea.hbm %s725_s3, %s363_s20  ;;  %s204_s22 = scalar_lea.vmem [#allocation7], %s350_s9 }
  0x30   : > { %v207_v3 = vpack.c.bf16 %v206_v2, %v206_v2  ;;  %v427_v4 = vld [vmem:[%s724_s2] ss:$0 sm:$0xff]  ;;  %s260_s23 = sshll.u32 %s204_s22, 4  ;;  %s262_s24 = sshll.u32 %s258_s21, 4  ;;  %s261_s23 = int_to_ptr.vmem [resolvable:$true] %s260_s23  ;;  %s263_s24 = int_to_ptr.hbm [resolvable:$true] %s262_s24 }
  0x31   : > { %s248_s25 = scalar_lea.sflag [#allocation4], %s674_s5  ;;  %s502_s19 = sshra.s32 %s263_s24, 4  ;;  %s503_s19 = int_to_ptr.hbm [resolvable:$true] %s502_s19 }
  0x32   : > { %s504_s27 = scalar_lea.hbm %s503_s19, 8  ;;  %s508_s8 = scalar_lea.hbm %s725_s3, 16 }
  0x33   : > { %239 = vmatpush.bf16.msra.mxu0 %v366_v1  ;;  %p505_p1 = scmp.ne.s32.totalorder %s503_s19, %s504_s27  ;;  %p509_p12 = scmp.lt.s32.totalorder %s503_s19, %s725_s3 }
  0x34   : > { %p510_p8 = scmp.lt.s32.totalorder %s508_s8, %s504_s27 }
  0x35   : > { %p506_p3 = pnand %p505_p1, %p643_p13 }
  0x36   : > { %361 = vmatmul.msk.bf16.vlgmr.msra.gmra.mxu0 %vm228_vm0, %v207_v3  ;;  %p511_p7 = por %p510_p8, %p509_p12 }
  0x37   : > { %p507_p5 = pneg %p506_p3 }
  0x39   : > { %p512_p9 = pnand %p511_p7, %p507_p5 }
  0xb3   : > { %v241_v5 = vpop.f32.mrf.mxu0 }
  0xb4   : > { %v242_v6 = vadd.f32 %v427_v4, %v241_v5 }
  0xb6   : > { %v245_v7 = vadd.f32 %v242_v6, %v206_v2 }
  0xb8   : > { %246 = vst.msk [vmem:[%s204_s22] sm:$0xff] %vm228_vm0, %v245_v7 }
  0xb9   : > { %515 = shalt.err (!%p512_p9)
}
  0xba   : > { %374 = dma.vmem_to_hbm [thread:$0]  (%p643_p13), %s261_s23, 128, %s263_s24, %s248_s25  }
  0xbb   : > { %v243_v8 = vpop.f32.mrf.mxu0 }
  0xbc PF: > { %s274_s5 = sand.u32 1, %s546_s12   ;;  %p731_p10 = scmp.ge.s32.totalorder %s558_s15, 2 }
  0xbd   : > { %s275_s11 = scalar_lea.sflag [#allocation4], %s274_s5 }
  0xbe   : > { %p385_p11 = pnand %p731_p10, %p648_p4 }
  0xc0   : > { %p386_p0 = pneg %p385_p11 }
  0xc2   : > { %541 = dma.done.wait (%p386_p0), %s275_s11, 128  }
  0xc3   : > { %543 = vsyncadd (%p386_p0), %s275_s11, 4294967168  ;;  %p17_p2 = scmp.ge.s32.totalorder %s623_s26, 4   ;;  %s732_s12 = smov %s550_s13 }
  0xc4   : > { %s733_s13 = smov %s554_s14  ;;  %s734_s14 = smov %s635_s29 }
  0xc5   : > { %s735_s15 = smov %s623_s26  ;;  %19 = sbr.rel (!%p17_p2) target bundleno = 6 (0x6), region = 81 }
  0xca   :  { %281 = vsyncpa [#allocation3], 1 }
  0xcb   :  { %283 = vsyncpa [#allocation3 + $0x1], 1 }
  0xcc   :  { %284 = vsyncpa [#allocation6], 1 }
  0xcd   :  { %285 = vsyncpa [#allocation4], 1 }
  0xce   :  { %287 = vsyncpa [#allocation4 + $0x1], 1 }

</bundles_post_ra>
